<compile_context>
chip_gen: v7x
topology: tpu7x:2x2x1
jax: 0.10.0
libtpu: 0.0.40
codegen_flags: <defaults>
</compile_context>

<pallas_src>
import math

import jax
import jax.numpy as jnp
from jax.experimental import pallas as pl
from jax.experimental.pallas import tpu as pltpu


def _build_embedding(num_steps: int, dim: int) -> jnp.ndarray:
    """Same as DiffusionEmbedding._build_embedding (dim = embedding_dim // 2)."""
    steps = jnp.arange(num_steps, dtype=jnp.float32)[:, None]                           # (T, 1)
    freqs = (10.0 ** (jnp.arange(dim, dtype=jnp.float32) / (dim - 1) * 4.0))[None, :]   # (1, dim)
    table = steps * freqs                                                               # (T, dim)
    return jnp.concatenate([jnp.sin(table), jnp.cos(table)], axis=1)                    # (T, 2*dim)


def _silu_f32(v):
    # sigmoid(v) = 1 / (1 + exp(-v)); exp and the approximate reciprocal both
    # run on the EUP, keeping the epilogue off the VALU divide path.
    return v * pl.reciprocal(1.0 + jnp.exp(-v), approx=True)


def _fused_kernel(steps_ref, table_ref, w1_ref, w2_ref, bias_ref, o_ref):
    B = o_ref.shape[0]
    T = table_ref.shape[0]

    # ---- fused embedding gather: one-hot(steps) @ table on the MXU ----------
    # Exact row selection: 0/1 bf16 selectors, f32 accumulation -> identical to
    # gathering the bf16 table rows directly.
    steps = steps_ref[...]                                        # (B, 1) int32
    iota = jax.lax.broadcasted_iota(jnp.int32, (B, T), 1)         # (B, T)
    onehot = (iota == steps).astype(jnp.bfloat16)                 # (B, T)
    x = jnp.dot(onehot, table_ref[...],
                preferred_element_type=jnp.float32)               # (B, E) f32

    b1 = bias_ref[0:1, :]                                         # (1, P) f32
    b2 = bias_ref[1:2, :]                                         # (1, P) f32

    # ---- projection1 + SiLU (bf16 MXU operands, f32 accumulate/elementwise) -
    h = jnp.dot(x.astype(jnp.bfloat16), w1_ref[...],
                preferred_element_type=jnp.float32) + b1
    h = _silu_f32(h)

    # ---- projection2 + SiLU --------------------------------------------------
    y = jnp.dot(h.astype(jnp.bfloat16), w2_ref[...],
                preferred_element_type=jnp.float32) + b2
    y = _silu_f32(y)

    o_ref[...] = y.astype(o_ref.dtype)


def diffusion_embedding_forward(diffusion_step, emb_table, w1, b1, w2, b2):
    """diffusion_step: (B,) int32; returns (B, projection_dim) float32."""
    B = diffusion_step.shape[0]
    T, E = emb_table.shape
    P = w1.shape[1]

    # bf16 weights/table halve the dominant DMA bytes; in a real model these
    # would be pre-cast once at load time rather than per call.
    steps_2d = diffusion_step.reshape(B, 1).astype(jnp.int32)
    table_bf = emb_table.astype(jnp.bfloat16)
    w1_bf = w1.astype(jnp.bfloat16)
    w2_bf = w2.astype(jnp.bfloat16)
    biases = jnp.stack([b1, b2], axis=0).astype(jnp.float32)      # (2, P)

    vmem = pltpu.MemorySpace.VMEM
    return pl.pallas_call(
        _fused_kernel,
        out_shape=jax.ShapeDtypeStruct((B, P), jnp.float32),
        in_specs=[
            pl.BlockSpec(memory_space=vmem),   # steps  (B, 1) int32
            pl.BlockSpec(memory_space=vmem),   # table  (T, E) bf16
            pl.BlockSpec(memory_space=vmem),   # w1     (E, P) bf16
            pl.BlockSpec(memory_space=vmem),   # w2     (P, P) bf16
            pl.BlockSpec(memory_space=vmem),   # biases (2, P) f32
        ],
        out_specs=pl.BlockSpec(memory_space=vmem),
    )(steps_2d, table_bf, w1_bf, w2_bf, biases)


if __name__ == "__main__":
    # Module hyper-params (PyTorch defaults, small shapes).
    num_steps = 50
    embedding_dim = 128
    projection_dim = 128
    batch = 8          # in a sampling loop, pass all timesteps at once (B=50+)

    key = jax.random.PRNGKey(0)
    k1, k2, k3, k4, k5 = jax.random.split(key, 5)

    # Buffer: sinusoidal embedding table (num_steps, embedding_dim).
    emb_table = _build_embedding(num_steps, embedding_dim // 2)

    # Deterministic parameter init (PyTorch Linear-style uniform bounds);
    # weights stored as (in_features, out_features) so the kernel does x @ W.
    lim1 = 1.0 / math.sqrt(embedding_dim)
    w1 = jax.random.uniform(k1, (embedding_dim, projection_dim), jnp.float32, -lim1, lim1)
    b1 = jax.random.uniform(k2, (projection_dim,), jnp.float32, -lim1, lim1)
    lim2 = 1.0 / math.sqrt(projection_dim)
    w2 = jax.random.uniform(k3, (projection_dim, projection_dim), jnp.float32, -lim2, lim2)
    b2 = jax.random.uniform(k4, (projection_dim,), jnp.float32, -lim2, lim2)

    # Example input: a batch of integer diffusion steps.
    diffusion_step = jax.random.randint(k5, (batch,), 0, num_steps, dtype=jnp.int32)

    out = diffusion_embedding_forward(diffusion_step, emb_table, w1, b1, w2, b2)
    out = jax.block_until_ready(out)

    # Pure-JAX f32 reference (original module semantics). Tolerance loosened
    # because the kernel uses bf16 MXU operands (f32 accumulation).
    x_ref = emb_table[diffusion_step]
    h_ref = x_ref @ w1 + b1
    h_ref = h_ref * jax.nn.sigmoid(h_ref)
    y_ref = h_ref @ w2 + b2
    y_ref = y_ref * jax.nn.sigmoid(y_ref)

    assert out.shape == (batch, projection_dim)
    assert jnp.allclose(out, y_ref, atol=3e-2, rtol=3e-2), "mismatch vs reference"

    print("KERNEL_OK")
</pallas_src>

<mosaic_0001>
module attributes {stable_mosaic.version = 11 : i64} {
  func.func @_fused_kernel(%arg0: memref<8x1xi32, #tpu.memory_space<vmem>>, %arg1: memref<50x128xbf16, #tpu.memory_space<vmem>>, %arg2: memref<128x128xbf16, #tpu.memory_space<vmem>>, %arg3: memref<128x128xbf16, #tpu.memory_space<vmem>>, %arg4: memref<2x128xf32, #tpu.memory_space<vmem>>, %arg5: memref<8x128xf32, #tpu.memory_space<vmem>>) attributes {dimension_semantics = [], scalar_prefetch = 0 : i64, scratch_operands = 0 : i64, tpu.core_type = #tpu.core_type<tc>} {
    %c0 = arith.constant 0 : index
    %c0_0 = arith.constant 0 : index
    %0 = vector.load %arg0[%c0, %c0_0] : memref<8x1xi32, #tpu.memory_space<vmem>>, vector<8x1xi32>
    %1 = tpu.iota {dimensions = array<i32: 1>} : vector<8x50xi32>
    %2 = vector.broadcast %0 : vector<8x1xi32> to vector<8x50xi32>
    %3 = arith.cmpi eq, %1, %2 : vector<8x50xi32>
    %4 = arith.extui %3 : vector<8x50xi1> to vector<8x50xi32>
    %5 = arith.sitofp %4 : vector<8x50xi32> to vector<8x50xf32>
    %6 = arith.truncf %5 : vector<8x50xf32> to vector<8x50xbf16>
    %c0_1 = arith.constant 0 : index
    %c0_2 = arith.constant 0 : index
    %7 = vector.load %arg1[%c0_1, %c0_2] : memref<50x128xbf16, #tpu.memory_space<vmem>>, vector<50x128xbf16>
    %cst = arith.constant dense<0.000000e+00> : vector<8x128xf32>
    %8 = tpu.matmul %6, %7, %cst {dimension_numbers = #tpu.dot_dimension_numbers<[1], [0], [0], [1], [0, 0, 1, 1], [], []>} : vector<8x50xbf16>, vector<50x128xbf16>, vector<8x128xf32> -> vector<8x128xf32>
    %c0_3 = arith.constant 0 : index
    %c0_4 = arith.constant 0 : index
    %9 = vector.load %arg4[%c0_3, %c0_4] : memref<2x128xf32, #tpu.memory_space<vmem>>, vector<1x128xf32>
    %c1 = arith.constant 1 : index
    %c0_5 = arith.constant 0 : index
    %10 = vector.load %arg4[%c1, %c0_5] : memref<2x128xf32, #tpu.memory_space<vmem>>, vector<1x128xf32>
    %11 = arith.truncf %8 : vector<8x128xf32> to vector<8x128xbf16>
    %c0_6 = arith.constant 0 : index
    %c0_7 = arith.constant 0 : index
    %12 = vector.load %arg2[%c0_6, %c0_7] : memref<128x128xbf16, #tpu.memory_space<vmem>>, vector<128x128xbf16>
    %cst_8 = arith.constant dense<0.000000e+00> : vector<8x128xf32>
    %13 = tpu.matmul %11, %12, %cst_8 {dimension_numbers = #tpu.dot_dimension_numbers<[1], [0], [0], [1], [0, 0, 1, 1], [], []>} : vector<8x128xbf16>, vector<128x128xbf16>, vector<8x128xf32> -> vector<8x128xf32>
    %14 = vector.broadcast %9 : vector<1x128xf32> to vector<8x128xf32>
    %15 = arith.addf %13, %14 : vector<8x128xf32>
    %cst_9 = arith.constant 0.000000e+00 : f32
    %16 = vector.broadcast %cst_9 : f32 to vector<8x128xf32>
    %17 = arith.subf %16, %15 : vector<8x128xf32>
    %18 = math.exp %17 : vector<8x128xf32>
    %cst_10 = arith.constant 1.000000e+00 : f32
    %19 = vector.broadcast %cst_10 : f32 to vector<8x128xf32>
    %20 = arith.addf %19, %18 : vector<8x128xf32>
    %21 = tpu.reciprocal %20 {approx = true} : vector<8x128xf32> -> vector<8x128xf32>
    %22 = arith.mulf %15, %21 : vector<8x128xf32>
    %23 = arith.truncf %22 : vector<8x128xf32> to vector<8x128xbf16>
    %c0_11 = arith.constant 0 : index
    %c0_12 = arith.constant 0 : index
    %24 = vector.load %arg3[%c0_11, %c0_12] : memref<128x128xbf16, #tpu.memory_space<vmem>>, vector<128x128xbf16>
    %cst_13 = arith.constant dense<0.000000e+00> : vector<8x128xf32>
    %25 = tpu.matmul %23, %24, %cst_13 {dimension_numbers = #tpu.dot_dimension_numbers<[1], [0], [0], [1], [0, 0, 1, 1], [], []>} : vector<8x128xbf16>, vector<128x128xbf16>, vector<8x128xf32> -> vector<8x128xf32>
    %26 = vector.broadcast %10 : vector<1x128xf32> to vector<8x128xf32>
    %27 = arith.addf %25, %26 : vector<8x128xf32>
    %cst_14 = arith.constant 0.000000e+00 : f32
    %28 = vector.broadcast %cst_14 : f32 to vector<8x128xf32>
    %29 = arith.subf %28, %27 : vector<8x128xf32>
    %30 = math.exp %29 : vector<8x128xf32>
    %cst_15 = arith.constant 1.000000e+00 : f32
    %31 = vector.broadcast %cst_15 : f32 to vector<8x128xf32>
    %32 = arith.addf %31, %30 : vector<8x128xf32>
    %33 = tpu.reciprocal %32 {approx = true} : vector<8x128xf32> -> vector<8x128xf32>
    %34 = arith.mulf %27, %33 : vector<8x128xf32>
    %c0_16 = arith.constant 0 : index
    %c0_17 = arith.constant 0 : index
    %35 = vector.load %arg5[%c0_16, %c0_17] : memref<8x128xf32, #tpu.memory_space<vmem>>, vector<8x128xf32>
    tpu.vector_store %arg5[%c0_16, %c0_17], %34 {strides = array<i32>} : memref<8x128xf32, #tpu.memory_space<vmem>>, vector<8x128xf32>,
    return
  }
}

</mosaic_0001>

<bundles_post_ra>
// kernel: tpu_custom_call.1
= control target key start
LH: loop header
LB: loop body
LE: loop exit
PB: predicated region body
PF: predicated region fallthrough
CT: control target
= control target key end

     0   :  { %10 = vsyncpa [#allocation3], 0  ;;  %s768_s0 = inlined_call_operand.vmem [shape: s32[8,1], index: 0, kind: input, shape index: {}]   ;;  %s769_s1 = inlined_call_operand.hbm [shape: bf16[50,128], index: 1, kind: input, shape index: {}]   ;;  %s770_s2 = inlined_call_operand.hbm [shape: bf16[128,128], index: 2, kind: input, shape index: {}]   ;;  %s771_s3 = inlined_call_operand.hbm [shape: bf16[128,128], index: 3, kind: input, shape index: {}]   ;;  %s772_s4 = inlined_call_operand.vmem [shape: f32[2,128], index: 4, kind: input, shape index: {}]   ;;  %s773_s5 = inlined_call_operand.hbm [shape: f32[8,128], index: 5, kind: output, shape index: {}]  }
   0x1   :  { %11 = vsyncpa [#allocation6], 0 }
   0x2   :  { %12 = vsyncpa [#allocation4], 0  ;;  %s629_s18 = smov [#allocation5]   ;;  %s630_s20 = smov [#allocation2]  }
   0x3   :  { %s32_s19 = sshll.u32 %s629_s18, 4  ;;  %s20_s21 = sshll.u32 %s630_s20, 4  ;;  %s33_s19 = int_to_ptr.vmem [resolvable:$true] %s32_s19  ;;  %s668_s21 = int_to_ptr.vmem [resolvable:$true] %s20_s21 }
   0x4   :  { %s535_s24 = scalar_lea.hbm %s770_s2, 1024 }
   0x5   :  { %p536_p0 = scmp.ne.s32.totalorder %s770_s2, %s535_s24  ;;  %p539_p1 = scmp.lt.u32.totalorder %s535_s24, %s770_s2 }
   0x7   :  { %p541_p2 = pnand %p539_p1, %p536_p0 }
   0x9   :  { %544 = shalt.err (!%p541_p2)
}
   0xa   :  { %s545_s29 = scalar_lea.vmem %s33_s19, 1024  ;;  %p550_p4 = scmp.lt.s32.totalorder %s33_s19, %s33_s19 }
   0xb   :  { %p546_p3 = scmp.ne.s32.totalorder %s33_s19, %s545_s29  ;;  %p551_p5 = scmp.lt.s32.totalorder %s545_s29, %s545_s29 }
   0xd   :  { %p552_p6 = por %p551_p5, %p550_p4 }
   0xf   :  { %p553_p7 = pnand %p552_p6, %p546_p3 }
  0x11   :  { %556 = shalt.err (!%p553_p7)
}
  0x12   :  { %s631_s30 = smov 64   ;;  %s632_s6 = smov 4  }
  0x13   :  { %38 = dma.hbm_to_vmem [thread:$0]  %s770_s2, 1024, %s33_s19, [#allocation6], %s631_s30, %s631_s30, %s632_s6  }
  0x14   :  { %s557_s11 = scalar_lea.hbm %s769_s1, 448 }
  0x15   :  { %p558_p8 = scmp.ne.s32.totalorder %s769_s1, %s557_s11  ;;  %p561_p9 = scmp.lt.u32.totalorder %s557_s11, %s769_s1 }
  0x17   :  { %p563_p10 = pnand %p561_p9, %p558_p8 }
  0x19   :  { %566 = shalt.err (!%p563_p10)
}
  0x1a   :  { %s567_s16 = scalar_lea.vmem %s668_s21, 448  ;;  %p572_p12 = scmp.lt.s32.totalorder %s668_s21, %s668_s21 }
  0x1b   :  { %p568_p11 = scmp.ne.s32.totalorder %s668_s21, %s567_s16  ;;  %p573_p13 = scmp.lt.s32.totalorder %s567_s16, %s567_s16 }
  0x1d   :  { %p574_p0 = por %p573_p13, %p572_p12 }
  0x1f   :  { %p575_p1 = pnand %p574_p0, %p568_p11 }
  0x21   :  { %578 = shalt.err (!%p575_p1)
}
  0x22   :  { %26 = dma.hbm_to_vmem [thread:$0]  %s769_s1, 448, %s668_s21, [#allocation3], %s631_s30, %s631_s30, %s632_s6  }
  0x23   :  { %s633_s18 = smov [#allocation7]   ;;  %s579_s23 = scalar_lea.hbm %s771_s3, 1024 }
  0x24   :  { %s44_s19 = sshll.u32 %s633_s18, 4  ;;  %p580_p2 = scmp.ne.s32.totalorder %s771_s3, %s579_s23  ;;  %s45_s19 = int_to_ptr.vmem [resolvable:$true] %s44_s19 }
  0x25   :  { %p583_p3 = scmp.lt.u32.totalorder %s579_s23, %s771_s3 }
  0x27   :  { %p585_p4 = pnand %p583_p3, %p580_p2 }
  0x29   :  { %588 = shalt.err (!%p585_p4)
}
  0x2a   :  { %s589_s28 = scalar_lea.vmem %s45_s19, 1024  ;;  %p594_p6 = scmp.lt.s32.totalorder %s45_s19, %s45_s19 }
  0x2b   :  { %p590_p5 = scmp.ne.s32.totalorder %s45_s19, %s589_s28  ;;  %p595_p7 = scmp.lt.s32.totalorder %s589_s28, %s589_s28 }
  0x2d   :  { %p596_p8 = por %p595_p7, %p594_p6 }
  0x2f   :  { %p597_p9 = pnand %p596_p8, %p590_p5 }
  0x31   :  { %600 = shalt.err (!%p597_p9)
}
  0x32   :  { %50 = dma.hbm_to_vmem [thread:$0]  %s771_s3, 1024, %s45_s19, [#allocation6], %s631_s30, %s631_s30, %s632_s6  }
  0x33   :  { %623 = dma.done.wait [#allocation3], 448  }
  0x34   :  { %624 = vsyncadd [#allocation3], 4294966848 }
  0x35   :  { %625 = dma.done.wait [#allocation6], 2048  }
  0x36   :  { %626 = vsyncadd [#allocation6], 4294965248  ;;  %v634_v0 = vmov 0   ;;  %v635_v1 = vmov 0.0   ;;  %v63_v2 = vld [vmem:[%s768_s0] sm:$0xff]  ;;  %v508_v4 = vld [vmem:[#allocation2 + $0x8] sm:$0xff]   ;;  %v64_v15 = vlaneseq }
  0x37   :  { %506 = vset.pattern.permute.xlu0 %v634_v0  ;;  %445 = vmatprep.subr.bf16.mxu0 %v635_v1  ;;  %v507_v3 = vld [vmem:[#allocation2] sm:$0xff]   ;;  %v510_v5 = vld [vmem:[#allocation2 + $0x18] ss:$0 sps:$4 sm:$0x11]   ;;  %vm636_vm0 = vmmov 0   ;;  %v509_v7 = vld [vmem:[#allocation2 + $0x10] sm:$0xff]  }
  0x38   :  { %457 = vmatprep.subr.bf16.mxu1 %v635_v1  ;;  %67 = vperm.xlu0 %506, %v63_v2   ;;  %v511_v6 = vld [vmem:[#allocation5] sm:$0xff]   ;;  %v512_v8 = vld [vmem:[#allocation5 + $0x8] sm:$0xff]   ;;  %vm105_vm1 = vcmask 1040384   ;;  %v513_v10 = vld [vmem:[#allocation5 + $0x10] sm:$0xff]   ;;  %v65_v16 = vand.u32 127, %v64_v15  ;;  %vm101_vm3 = vcmask 408576  }
  0x39   :  { %446 = vmatpush3.bf16.msra.mxu0 %v507_v3  ;;  %453 = vmatprep.mubr.msk.bf16.mxu0 %vm636_vm0, %v635_v1  ;;  %v107_v9 = vsel %vm105_vm1, %v510_v5, 0  ;;  %v514_v11 = vld [vmem:[#allocation5 + $0x18] sm:$0xff]   ;;  %v515_v12 = vld [vmem:[#allocation5 + $0x20] sm:$0xff]   ;;  %v516_v13 = vld [vmem:[#allocation5 + $0x28] sm:$0xff]   ;;  %s637_s8 = smov [#allocation8]  }
  0x3a   :  { %447 = vmatprep.subr.bf16.mxu0 %v635_v1  ;;  %473 = vmatprep.mubr.msk.bf16.mxu1 %vm636_vm0, %v635_v1  ;;  %v517_v14 = vld [vmem:[#allocation5 + $0x30] sm:$0xff]   ;;  %v518_v20 = vld [vmem:[#allocation5 + $0x38] sm:$0xff]   ;;  %v519_v26 = vld [vmem:[#allocation7] sm:$0xff]   ;;  %s388_s9 = sshll.u32 %s637_s8, 4  ;;  %s389_s9 = int_to_ptr.vmem [resolvable:$true] %s388_s9 }
  0x3b   :  { %458 = vmatpush3.bf16.msra.mxu1 %v511_v6  ;;  %v520_v27 = vld [vmem:[#allocation7 + $0x8] sm:$0xff]   ;;  %v521_v28 = vld [vmem:[#allocation7 + $0x10] sm:$0xff]   ;;  %v522_v29 = vld [vmem:[#allocation7 + $0x18] sm:$0xff]   ;;  %s601_s10 = scalar_lea.vmem %s389_s9, 128  ;;  %p606_p11 = scmp.lt.s32.totalorder %s389_s9, %s389_s9 }
  0x3c   :  { %459 = vmatprep.subr.bf16.mxu1 %v635_v1  ;;  %v523_v30 = vld [vmem:[#allocation7 + $0x20] sm:$0xff]   ;;  %v524_v31 = vld [vmem:[#allocation7 + $0x28] sm:$0xff]   ;;  %v525_v32 = vld [vmem:[#allocation7 + $0x30] sm:$0xff]   ;;  %p602_p10 = scmp.ne.s32.totalorder %s389_s9, %s601_s10  ;;  %p607_p12 = scmp.lt.s32.totalorder %s601_s10, %s601_s10 }
  0x3d   :  { %448 = vmatpush3.bf16.msra.mxu0 %v508_v4  ;;  %v526_v33 = vld [vmem:[#allocation7 + $0x38] sm:$0xff]   ;;  %v404_v34 = vld [vmem:[%s772_s4] ss:$0 sm:$0xff]  ;;  %v413_v47 = vld [vmem:[%s772_s4 + $0x1] ss:$0 sm:$0xff] }
  0x3e   :  { %449 = vmatprep.subr.bf16.mxu0 %v635_v1  ;;  %p608_p13 = por %p607_p12, %p606_p11 }
  0x3f   :  { %460 = vmatpush3.bf16.msra.mxu1 %v512_v8 }
  0x40   :  { %461 = vmatprep.subr.bf16.mxu1 %v635_v1  ;;  %p609_p0 = pnand %p608_p13, %p602_p10 }
  0x41   :  { %450 = vmatpush3.bf16.msra.mxu0 %v509_v7 }
  0x42   :  { %451 = vmatprep.subr.bf16.mxu0 %v635_v1 }
  0x43   :  { %462 = vmatpush3.bf16.msra.mxu1 %v513_v10 }
  0x44   :  { %463 = vmatprep.subr.bf16.mxu1 %v635_v1 }
  0x45   :  { %452 = vmatpush3.bf16.msra.mxu0 %v107_v9 }
  0x46   :  { %477 = vmatprep.subr.bf16.mxu0 %v635_v1 }
  0x47   :  { %464 = vmatpush3.bf16.msra.mxu1 %v514_v11 }
  0x48   :  { %465 = vmatprep.subr.bf16.mxu1 %v635_v1 }
  0x4b   :  { %466 = vmatpush3.bf16.msra.mxu1 %v515_v12 }
  0x4c   :  { %467 = vmatprep.subr.bf16.mxu1 %v635_v1 }
  0x4f   :  { %468 = vmatpush3.bf16.msra.mxu1 %v516_v13 }
  0x50   :  { %469 = vmatprep.subr.bf16.mxu1 %v635_v1 }
  0x53   :  { %470 = vmatpush3.bf16.msra.mxu1 %v517_v14 }
  0x54   :  { %471 = vmatprep.subr.bf16.mxu1 %v635_v1 }
  0x57   :  { %472 = vmatpush3.bf16.msra.mxu1 %v518_v20 }
  0xb7   :  { %v68_v17 = vpop.permute.xlu0 %67 }
  0xb8   :  { %vm69_vm2 = vcmp.eq.s32.totalorder %v65_v16, %v68_v17 }
  0xb9   :  { %v398_v18 = vsel %vm69_vm2, 1.0, %v635_v1 }
  0xba   :  { %v72_v19 = vpack.c.bf16 %v398_v18, %v398_v18 }
  0xbc   :  { %454 = vmatmul.mubr.msk.bf16.vlgmr.msra.gmra.mrb[0].mxu0 %vm101_vm3, %v72_v19 }
  0xbd   :  { %493 = vmatprep.mubr.msk.bf16.mxu0 %vm636_vm0, %v635_v1  ;;  %478 = vmatpush3.bf16.msra.mxu0 %v519_v26 }
  0xbe   :  { %479 = vmatprep.subr.bf16.mxu0 %v635_v1 }
  0xc1   :  { %480 = vmatpush3.bf16.msra.mxu0 %v520_v27 }
  0xc2   :  { %481 = vmatprep.subr.bf16.mxu0 %v635_v1 }
  0xc5   :  { %482 = vmatpush3.bf16.msra.mxu0 %v521_v28 }
  0xc6   :  { %483 = vmatprep.subr.bf16.mxu0 %v635_v1 }
  0xc9   :  { %484 = vmatpush3.bf16.msra.mxu0 %v522_v29 }
  0xca   :  { %485 = vmatprep.subr.bf16.mxu0 %v635_v1 }
  0xcd   :  { %486 = vmatpush3.bf16.msra.mxu0 %v523_v30 }
  0xce   :  { %487 = vmatprep.subr.bf16.mxu0 %v635_v1 }
  0xd1   :  { %488 = vmatpush3.bf16.msra.mxu0 %v524_v31 }
  0xd2   :  { %489 = vmatprep.subr.bf16.mxu0 %v635_v1 }
  0xd5   :  { %490 = vmatpush3.bf16.msra.mxu0 %v525_v32 }
  0xd6   :  { %491 = vmatprep.subr.bf16.mxu0 %v635_v1 }
  0xd9   :  { %492 = vmatpush3.bf16.msra.mxu0 %v526_v33 }
 0x18f   :  { %v143_v21 = vpop.f32.mrb[0].mxu0 }
 0x190   :  { %v151_v22 = vpack.c.bf16 %v143_v21, %v143_v21  ;;  %v455_v23 = vpop.f32.mrb[1].mxu0 }
 0x191   :  { %v146_v24 = vpop.f32.mrb[2].mxu0 }
 0x192   :  { %v456_v25 = vpop.f32.mrb[3].mxu0  ;;  %474 = vmatmul.mubr.bf16.vlgmr.msra.gmra.mrb[0].mxu1 %v151_v22 }
 0x265   :  { %v254_v35 = vpop.f32.mrb[0].mxu1 }
 0x266   :  { %v255_v36 = vadd.f32 %v404_v34, %v254_v35  ;;  %v475_v37 = vpop.f32.mrb[1].mxu1 }
 0x267   :  { %v257_v38 = vpop.f32.mrb[2].mxu1 }
 0x268   :  { %v260_v39 = vsub.f32 0.0, %v255_v36  ;;  %v476_v40 = vpop.f32.mrb[3].mxu1 }
 0x26a   :  { %v261_v41 = vmul.f32 1.442695, %v260_v39 }
 0x26c   :  { %527 = vpow2.f32 %v261_v41 }
 0x276   :  { %v528_v42 = vpop.eup %527 }
 0x277   :  { %v263_v43 = vadd.f32 1.0, %v528_v42 }
 0x279   :  { %529 = vrcp.f32 %v263_v43 }
 0x283   :  { %v530_v44 = vpop.eup %529 }
 0x284   :  { %v265_v45 = vmul.f32 %v530_v44, %v255_v36 }
 0x286   :  { %v266_v46 = vpack.c.bf16 %v265_v45, %v265_v45 }
 0x288   :  { %494 = vmatmul.mubr.bf16.vlgmr.msra.gmra.mrb[4].mxu0 %v266_v46 }
 0x35b   :  { %v369_v48 = vpop.f32.mrb[4].mxu0 }
 0x35c   :  { %v370_v49 = vadd.f32 %v413_v47, %v369_v48  ;;  %v495_v50 = vpop.f32.mrb[5].mxu0 }
 0x35d   :  { %v372_v51 = vpop.f32.mrb[6].mxu0 }
 0x35e   :  { %v375_v52 = vsub.f32 0.0, %v370_v49  ;;  %v496_v53 = vpop.f32.mrb[7].mxu0 }
 0x360   :  { %v376_v54 = vmul.f32 1.442695, %v375_v52 }
 0x362   :  { %531 = vpow2.f32 %v376_v54 }
 0x36c   :  { %v532_v55 = vpop.eup %531 }
 0x36d   :  { %v378_v56 = vadd.f32 1.0, %v532_v55 }
 0x36f   :  { %533 = vrcp.f32 %v378_v56 }
 0x379   :  { %v534_v57 = vpop.eup %533 }
 0x37a   :  { %v380_v58 = vmul.f32 %v534_v57, %v370_v49 }
 0x37c   :  { %381 = vst [vmem:[#allocation8] sm:$0xff] %v380_v58 }
 0x37d   :  { %612 = shalt.err (!%p609_p0)
}
 0x37e   :  { %s613_s12 = scalar_lea.hbm %s773_s5, 128 }
 0x37f   :  { %p614_p1 = scmp.ne.s32.totalorder %s773_s5, %s613_s12  ;;  %p617_p2 = scmp.lt.u32.totalorder %s613_s12, %s773_s5 }
 0x381   :  { %p619_p3 = pnand %p617_p2, %p614_p1 }
 0x383   :  { %622 = shalt.err (!%p619_p3)
}
 0x384   :  { %391 = dma.vmem_to_hbm [thread:$0]  %s389_s9, 128, %s773_s5, [#allocation4]  }
 0x385   :  { %627 = dma.done.wait [#allocation4], 128  }
 0x386   :  { %628 = vsyncadd [#allocation4], 4294967168 }
 0x387   :  { %395 = vsyncpa [#allocation3], 1 }
 0x388   :  { %396 = vsyncpa [#allocation6], 1 }
 0x389   :  { %397 = vsyncpa [#allocation4], 1 }

</bundles_post_ra>
